<compile_context>
chip_gen: v6e
topology: v6e:2x2x1
jax: 0.10.0
libtpu: 0.0.40
codegen_flags: <defaults>
</compile_context>

<pallas_src>
import functools

import jax
import jax.numpy as jnp
import numpy as np
from jax import lax
from jax.experimental import pallas as pl
from jax.experimental.pallas import tpu as pltpu


# ----------------------------------------------------------------------------
# Pallas kernel: fused [x2 bilinear upsample + crop + channel concat +
# 3x3 conv (no bias) + BN(eval) + ReLU] in a lane-dense layout
# (channels on sublanes, flattened H*W on lanes).
# ----------------------------------------------------------------------------
def _fused_upsample_conv_bn_relu_kernel(x_ref, f_ref, s_ref, mask_ref, mt_ref,
                                        w_ref, shift_ref, o_ref, *,
                                        width, cs_used):
    # x_ref    : (nb, Cx, h*w)        half-resolution input, spatially flat
    # f_ref    : (nb, Cf, H*W)
    # s_ref    : (nb, Cs_full, H*W)   only the first cs_used channels are used
    # mask_ref : (2, H*W)             row 0: 0.0 where x == 0 ; row 1: 0.0 where x == W-1
    # mt_ref   : (h*w, H*W)           x2 bilinear (align_corners=False) + crop matrix
    # w_ref    : (3*Cout, 3*Cin)      conv weight * BN-scale; rows (ky, o), cols (kx, c)
    # shift_ref: (Cout, 1)            folded BN shift = beta - mean * scale
    # o_ref    : (nb, Cout, H*W)
    W = width
    nb, Cx, _ = x_ref.shape
    Cf = f_ref.shape[1]
    HW = f_ref.shape[2]
    Cout = shift_ref.shape[0]
    Cin = Cx + Cf + cs_used

    # Hoisted constants (loaded once, reused by every packed frame).
    m_left = mask_ref[0:1, :]          # kills wrapped values when a tap reads x-1
    m_right = mask_ref[1:2, :]         # kills wrapped values when a tap reads x+1
    mt = mt_ref[...]                   # (h*w, H*W) f32
    wk = w_ref[...]                    # (3*Cout, 3*Cin), f32 or bf16
    shift = shift_ref[...]             # (Cout, 1)   f32
    zcol = jnp.zeros((Cin, 1), jnp.float32)
    zrow = jnp.zeros((Cout, W), jnp.float32)

    for b in range(nb):                # static unroll over packed frames
        # --- fused x2 bilinear upsample (align_corners=False) + crop:
        #     one MXU matmul, no HBM round trip of the upsampled tensor.
        xu = jnp.dot(x_ref[b].astype(jnp.float32), mt,
                     preferred_element_type=jnp.float32)           # (Cx, HW)

        # --- channel concat (torch.cat([x, f, s], dim=1)); s may carry extra
        #     channels (time-series path) -> slice to cs_used here in VMEM.
        cat = jnp.concatenate(
            [xu,
             f_ref[b].astype(jnp.float32),
             s_ref[b][:cs_used].astype(jnp.float32)], axis=0)       # (Cin, HW)

        # --- only the 3 horizontal (kx) tap variants are materialized; the
        #     left/right column masks reproduce the conv's zero padding in x.
        h_m = jnp.concatenate([zcol, cat[:, :HW - 1]], axis=1) * m_left
        h_p = jnp.concatenate([cat[:, 1:], zcol], axis=1) * m_right
        hpat = jnp.concatenate([h_m, cat, h_p], axis=0)             # (3*Cin, HW)

        # --- single MXU matmul gives the per-ky partial sums stacked on rows.
        r = jnp.dot(wk, hpat.astype(wk.dtype),
                    preferred_element_type=jnp.float32)             # (3*Cout, HW)
        r0, r1, r2 = r[:Cout], r[Cout:2 * Cout], r[2 * Cout:]

        # --- vertical (ky) taps = +-W lane shifts of the tiny partial sums;
        #     the zero fill reproduces the conv's top/bottom zero padding.
        acc = (jnp.concatenate([zrow, r0[:, :HW - W]], axis=1)      # ky = 0
               + r1                                                 # ky = 1
               + jnp.concatenate([r2[:, W:], zrow], axis=1))        # ky = 2

        # --- BN scale already folded into wk; only shift + ReLU remain.
        o_ref[b] = jnp.maximum(acc + shift, 0.0).astype(o_ref.dtype)


# ----------------------------------------------------------------------------
# Wrapper helpers
# ----------------------------------------------------------------------------
def _upsample_matrix_1d(n_in, n_keep):
    """1-D x2 bilinear (align_corners=False) interpolation matrix, cropped to
    the first n_keep output rows (module: scale_factor=2 upsample then crop)."""
    assert n_keep <= 2 * n_in
    u = np.zeros((n_keep, n_in), np.float32)
    for i in range(n_keep):
        src = (i + 0.5) / 2.0 - 0.5
        j0 = int(np.floor(src))
        frac = src - j0
        j0c = min(max(j0, 0), n_in - 1)
        j1c = min(max(j0 + 1, 0), n_in - 1)
        u[i, j0c] += 1.0 - frac
        u[i, j1c] += frac
    return u


def _pick_frames_per_step(n):
    """Pack several small frames per grid step (amortizes per-step overhead)
    while keeping >= 2 grid steps so the 'parallel' axis feeds both TCs on v7x."""
    best = 1
    for d in (2, 3, 4):
        if n % d == 0 and n // d >= 2:
            best = d
    return best


def _forward_4d(x, f, s, w_oihw, gamma, beta, run_mean, run_var, eps, mm_dtype):
    N, Cx, h, w = x.shape
    Cf = f.shape[1]
    Cs_full = s.shape[1]
    H, W = s.shape[2], s.shape[3]
    Cout, Cin = w_oihw.shape[0], w_oihw.shape[1]
    Cs_used = Cin - Cx - Cf
    assert 0 < Cs_used <= Cs_full
    assert H <= 2 * h and W <= 2 * w
    assert f.shape[2] == H and f.shape[3] == W
    HW, hw = H * W, h * w
    # TODO(synk): pad W so HW is a multiple of 128 when the real model's
    # spatial size isn't (keeps output stores lane-dense).

    # Metadata-only spatial flattening (no HBM pass).
    x_flat = x.reshape(N, Cx, hw)
    f_flat = f.reshape(N, Cf, HW)
    s_flat = s.reshape(N, Cs_full, HW)

    # Fold BatchNorm (eval) into a per-channel scale/shift; scale goes into w.
    scale = (gamma / jnp.sqrt(run_var + eps)).astype(jnp.float32)
    shift = (beta.astype(jnp.float32) - run_mean.astype(jnp.float32) * scale)
    shift = shift.reshape(Cout, 1)

    # Weight stack: rows (ky, o), cols (kx, c); BN scale folded in.
    w_sc = w_oihw.astype(jnp.float32) * scale.reshape(Cout, 1, 1, 1)
    wstack = jnp.transpose(w_sc, (2, 0, 3, 1)).reshape(3 * Cout, 3 * Cin)
    wstack = wstack.astype(mm_dtype)

    # Separable (Kronecker) x2 bilinear upsample + crop matrix (tiny constant).
    # TODO(synk): switch to a two-pass separable upsample for large H*W.
    uv = _upsample_matrix_1d(h, H)
    uh = _upsample_matrix_1d(w, W)
    mt = jnp.asarray(np.kron(uv, uh).T.astype(np.float32))          # (hw, HW)

    # Left/right column masks for the horizontal conv taps.
    col = np.arange(HW, dtype=np.int64) % W
    mask = jnp.asarray(
        np.stack([(col != 0), (col != W - 1)], axis=0).astype(np.float32))

    nb = _pick_frames_per_step(N)
    kernel = functools.partial(_fused_upsample_conv_bn_relu_kernel,
                               width=W, cs_used=Cs_used)

    out_flat = pl.pallas_call(
        kernel,
        out_shape=jax.ShapeDtypeStruct((N, Cout, HW), x.dtype),
        grid_spec=pltpu.PrefetchScalarGridSpec(
            num_scalar_prefetch=0,
            grid=(N // nb,),
            in_specs=[
                pl.BlockSpec((nb, Cx, hw), lambda n: (n, 0, 0)),
                pl.BlockSpec((nb, Cf, HW), lambda n: (n, 0, 0)),
                pl.BlockSpec((nb, Cs_full, HW), lambda n: (n, 0, 0)),
                pl.BlockSpec((2, HW), lambda n: (0, 0)),
                pl.BlockSpec((hw, HW), lambda n: (0, 0)),
                pl.BlockSpec((3 * Cout, 3 * Cin), lambda n: (0, 0)),
                pl.BlockSpec((Cout, 1), lambda n: (0, 0)),
            ],
            out_specs=pl.BlockSpec((nb, Cout, HW), lambda n: (n, 0, 0)),
        ),
        compiler_params=pltpu.CompilerParams(
            dimension_semantics=("parallel",),
            vmem_limit_bytes=32 * 1024 * 1024),
        # TODO(synk): for large H*W add a halo-aware row-strip grid axis
        # (also marked "parallel") so the working set fits v7x/v5e VMEM.
    )(x_flat, f_flat, s_flat, mask, mt, wstack, shift)
    return out_flat.reshape(N, Cout, H, W)


def upsampling_block_forward(x, f, s, weight_oihw, gamma, beta, run_mean,
                             run_var, eps=1e-5, mm_dtype=jnp.float32):
    """Forward of UpsamplingBlock. x/f/s are NCHW or (B, T, C, H, W).
    mm_dtype=jnp.bfloat16 enables bf16 MXU operands (f32 accumulate) on v6e/v7x."""
    if x.ndim == 5:
        B, T = s.shape[0], s.shape[1]
        x4 = x.reshape((B * T,) + x.shape[2:])
        f4 = f.reshape((B * T,) + f.shape[2:])
        s4 = s.reshape((B * T,) + s.shape[2:])   # kernel uses first 3 channels
        out = _forward_4d(x4, f4, s4, weight_oihw, gamma, beta, run_mean,
                          run_var, eps, mm_dtype)
        return out.reshape((B, T) + out.shape[1:])
    return _forward_4d(x, f, s, weight_oihw, gamma, beta, run_mean, run_var,
                       eps, mm_dtype)


# ----------------------------------------------------------------------------
# Pure-JAX reference (for correctness check)
# ----------------------------------------------------------------------------
def _reference(x, f, s, w_oihw, gamma, beta, run_mean, run_var, eps=1e-5):
    N, Cx, h, w = x.shape
    H, W = s.shape[2], s.shape[3]
    xu = jax.image.resize(x, (N, Cx, 2 * h, 2 * w), method="bilinear")[:, :, :H, :W]
    cat = jnp.concatenate([xu, f, s], axis=1)
    y = lax.conv_general_dilated(cat, w_oihw, (1, 1), "SAME",
                                 dimension_numbers=("NCHW", "OIHW", "NCHW"))
    scale = gamma / jnp.sqrt(run_var + eps)
    shift = beta - run_mean * scale
    y = y * scale.reshape(1, -1, 1, 1) + shift.reshape(1, -1, 1, 1)
    return jnp.maximum(y, 0.0)


if __name__ == "__main__":
    key = jax.random.PRNGKey(0)
    B = 2
    in_ch, skip_ch, src_ch, out_ch = 4, 3, 3, 8
    H, W = 16, 16

    ks = jax.random.split(key, 8)
    # Single-frame path inputs: x is at half resolution.
    x = jax.random.normal(ks[0], (B, in_ch, H // 2, W // 2), jnp.float32)
    f = jax.random.normal(ks[1], (B, skip_ch, H, W), jnp.float32)
    s = jax.random.normal(ks[2], (B, src_ch, H, W), jnp.float32)

    cin_total = in_ch + skip_ch + src_ch
    weight = 0.1 * jax.random.normal(ks[3], (out_ch, cin_total, 3, 3), jnp.float32)
    gamma = jax.random.uniform(ks[4], (out_ch,), jnp.float32, 0.5, 1.5)
    beta = 0.1 * jax.random.normal(ks[5], (out_ch,), jnp.float32)
    run_mean = 0.1 * jax.random.normal(ks[6], (out_ch,), jnp.float32)
    run_var = jax.random.uniform(ks[7], (out_ch,), jnp.float32, 0.5, 1.5)

    # ---- single-frame path (f32 matmul operands, tight tolerance) ----
    out = upsampling_block_forward(x, f, s, weight, gamma, beta, run_mean, run_var)
    out = jax.block_until_ready(out)
    assert out.shape == (B, out_ch, H, W), out.shape
    ref = _reference(x, f, s, weight, gamma, beta, run_mean, run_var)
    assert jnp.allclose(out, ref, atol=2e-4, rtol=2e-4), \
        float(jnp.max(jnp.abs(out - ref)))

    # ---- time-series path (B, T, C, H, W); s has an extra channel, the module
    #      only uses its first 3 channels; exercises frame packing (nb=3) ----
    T = 3
    xt = jax.random.normal(ks[0], (B, T, in_ch, H // 2, W // 2), jnp.float32)
    ft = jax.random.normal(ks[1], (B, T, skip_ch, H, W), jnp.float32)
    st = jax.random.normal(ks[2], (B, T, src_ch + 1, H, W), jnp.float32)
    out_t = upsampling_block_forward(xt, ft, st, weight, gamma, beta,
                                     run_mean, run_var)
    out_t = jax.block_until_ready(out_t)
    assert out_t.shape == (B, T, out_ch, H, W), out_t.shape
    ref_t = _reference(xt.reshape(B * T, in_ch, H // 2, W // 2),
                       ft.reshape(B * T, skip_ch, H, W),
                       st.reshape(B * T, src_ch + 1, H, W)[:, :3],
                       weight, gamma, beta, run_mean, run_var)
    ref_t = ref_t.reshape(B, T, out_ch, H, W)
    assert jnp.allclose(out_t, ref_t, atol=2e-4, rtol=2e-4), \
        float(jnp.max(jnp.abs(out_t - ref_t)))

    # ---- bf16 MXU-operand path (v6e/v7x recommendation; looser numerics) ----
    out_bf = upsampling_block_forward(x, f, s, weight, gamma, beta, run_mean,
                                      run_var, mm_dtype=jnp.bfloat16)
    out_bf = jax.block_until_ready(out_bf)
    assert out_bf.shape == (B, out_ch, H, W), out_bf.shape
    assert jnp.allclose(out_bf, ref, atol=5e-2, rtol=5e-2), \
        float(jnp.max(jnp.abs(out_bf - ref)))

    print("KERNEL_OK")
</pallas_src>

<mosaic_0001>
module attributes {stable_mosaic.version = 11 : i64} {
  func.func @_fused_upsample_conv_bn_relu_kernel(%arg0: i32, %arg1: memref<1x4x64xf32, #tpu.memory_space<vmem>>, %arg2: memref<1x3x256xf32, #tpu.memory_space<vmem>>, %arg3: memref<1x3x256xf32, #tpu.memory_space<vmem>>, %arg4: memref<2x256xf32, #tpu.memory_space<vmem>>, %arg5: memref<64x256xf32, #tpu.memory_space<vmem>>, %arg6: memref<24x30xf32, #tpu.memory_space<vmem>>, %arg7: memref<8x1xf32, #tpu.memory_space<vmem>>, %arg8: memref<1x8x256xf32, #tpu.memory_space<vmem>>) attributes {dimension_semantics = [#tpu.dimension_semantics<parallel>], iteration_bounds = array<i64: 2>, scalar_prefetch = 0 : i64, scratch_operands = 0 : i64, tpu.core_type = #tpu.core_type<tc>, window_params = [{transform_indices = @transform_0, window_bounds = array<i64: 1, 4, 64>}, {transform_indices = @transform_1, window_bounds = array<i64: 1, 3, 256>}, {transform_indices = @transform_2, window_bounds = array<i64: 1, 3, 256>}, {pipeline_mode = #tpu.pipeline_mode<synchronous>, transform_indices = @transform_3, window_bounds = array<i64: 2, 256>}, {pipeline_mode = #tpu.pipeline_mode<synchronous>, transform_indices = @transform_4, window_bounds = array<i64: 64, 256>}, {pipeline_mode = #tpu.pipeline_mode<synchronous>, transform_indices = @transform_5, window_bounds = array<i64: 24, 30>}, {pipeline_mode = #tpu.pipeline_mode<synchronous>, transform_indices = @transform_6, window_bounds = array<i64: 8, 1>}, {transform_indices = @transform_7, window_bounds = array<i64: 1, 8, 256>}]} {
    %c0 = arith.constant 0 : index
    %c0_0 = arith.constant 0 : index
    %0 = vector.load %arg4[%c0, %c0_0] : memref<2x256xf32, #tpu.memory_space<vmem>>, vector<1x256xf32>
    %c1 = arith.constant 1 : index
    %c0_1 = arith.constant 0 : index
    %1 = vector.load %arg4[%c1, %c0_1] : memref<2x256xf32, #tpu.memory_space<vmem>>, vector<1x256xf32>
    %c0_2 = arith.constant 0 : index
    %c0_3 = arith.constant 0 : index
    %2 = vector.load %arg5[%c0_2, %c0_3] : memref<64x256xf32, #tpu.memory_space<vmem>>, vector<64x256xf32>
    %c0_4 = arith.constant 0 : index
    %c0_5 = arith.constant 0 : index
    %3 = vector.load %arg6[%c0_4, %c0_5] : memref<24x30xf32, #tpu.memory_space<vmem>>, vector<24x30xf32>
    %c0_6 = arith.constant 0 : index
    %c0_7 = arith.constant 0 : index
    %4 = vector.load %arg7[%c0_6, %c0_7] : memref<8x1xf32, #tpu.memory_space<vmem>>, vector<8x1xf32>
    %cst = arith.constant 0.000000e+00 : f32
    %5 = vector.broadcast %cst : f32 to vector<10x1xf32>
    %cst_8 = arith.constant 0.000000e+00 : f32
    %6 = vector.broadcast %cst_8 : f32 to vector<8x16xf32>
    %c0_9 = arith.constant 0 : index
    %c0_10 = arith.constant 0 : index
    %c0_11 = arith.constant 0 : index
    %7 = vector.load %arg1[%c0_9, %c0_10, %c0_11] : memref<1x4x64xf32, #tpu.memory_space<vmem>>, vector<1x4x64xf32>
    %8 = vector.shape_cast %7 : vector<1x4x64xf32> to vector<4x64xf32>
    %cst_12 = arith.constant dense<0.000000e+00> : vector<4x256xf32>
    %9 = tpu.matmul %8, %2, %cst_12 {dimension_numbers = #tpu.dot_dimension_numbers<[1], [0], [0], [1], [0, 0, 1, 1], [], []>} : vector<4x64xf32>, vector<64x256xf32>, vector<4x256xf32> -> vector<4x256xf32>
    %c0_13 = arith.constant 0 : index
    %c0_14 = arith.constant 0 : index
    %c0_15 = arith.constant 0 : index
    %10 = vector.load %arg2[%c0_13, %c0_14, %c0_15] : memref<1x3x256xf32, #tpu.memory_space<vmem>>, vector<1x3x256xf32>
    %11 = vector.shape_cast %10 : vector<1x3x256xf32> to vector<3x256xf32>
    %c0_16 = arith.constant 0 : index
    %c0_17 = arith.constant 0 : index
    %c0_18 = arith.constant 0 : index
    %12 = vector.load %arg3[%c0_16, %c0_17, %c0_18] : memref<1x3x256xf32, #tpu.memory_space<vmem>>, vector<1x3x256xf32>
    %13 = vector.shape_cast %12 : vector<1x3x256xf32> to vector<3x256xf32>
    %14 = tpu.concatenate %9, %11, %13 in 0 : vector<4x256xf32>, vector<3x256xf32>, vector<3x256xf32> -> vector<10x256xf32>
    %15 = vector.extract_strided_slice %14 {offsets = [0, 0], sizes = [10, 255], strides = [1, 1]} : vector<10x256xf32> to vector<10x255xf32>
    %16 = tpu.concatenate %5, %15 in 1 : vector<10x1xf32>, vector<10x255xf32> -> vector<10x256xf32>
    %17 = vector.broadcast %0 : vector<1x256xf32> to vector<10x256xf32>
    %18 = arith.mulf %16, %17 : vector<10x256xf32>
    %19 = vector.extract_strided_slice %14 {offsets = [0, 1], sizes = [10, 255], strides = [1, 1]} : vector<10x256xf32> to vector<10x255xf32>
    %20 = tpu.concatenate %19, %5 in 1 : vector<10x255xf32>, vector<10x1xf32> -> vector<10x256xf32>
    %21 = vector.broadcast %1 : vector<1x256xf32> to vector<10x256xf32>
    %22 = arith.mulf %20, %21 : vector<10x256xf32>
    %23 = tpu.concatenate %18, %14, %22 in 0 : vector<10x256xf32>, vector<10x256xf32>, vector<10x256xf32> -> vector<30x256xf32>
    %cst_19 = arith.constant dense<0.000000e+00> : vector<24x256xf32>
    %24 = tpu.matmul %3, %23, %cst_19 {dimension_numbers = #tpu.dot_dimension_numbers<[1], [0], [0], [1], [0, 0, 1, 1], [], []>} : vector<24x30xf32>, vector<30x256xf32>, vector<24x256xf32> -> vector<24x256xf32>
    %25 = vector.extract_strided_slice %24 {offsets = [0, 0], sizes = [8, 256], strides = [1, 1]} : vector<24x256xf32> to vector<8x256xf32>
    %26 = vector.extract_strided_slice %24 {offsets = [8, 0], sizes = [8, 256], strides = [1, 1]} : vector<24x256xf32> to vector<8x256xf32>
    %27 = vector.extract_strided_slice %24 {offsets = [16, 0], sizes = [8, 256], strides = [1, 1]} : vector<24x256xf32> to vector<8x256xf32>
    %28 = vector.extract_strided_slice %25 {offsets = [0, 0], sizes = [8, 240], strides = [1, 1]} : vector<8x256xf32> to vector<8x240xf32>
    %29 = tpu.concatenate %6, %28 in 1 : vector<8x16xf32>, vector<8x240xf32> -> vector<8x256xf32>
    %30 = arith.addf %29, %26 : vector<8x256xf32>
    %31 = vector.extract_strided_slice %27 {offsets = [0, 16], sizes = [8, 240], strides = [1, 1]} : vector<8x256xf32> to vector<8x240xf32>
    %32 = tpu.concatenate %31, %6 in 1 : vector<8x240xf32>, vector<8x16xf32> -> vector<8x256xf32>
    %33 = arith.addf %30, %32 : vector<8x256xf32>
    %34 = vector.broadcast %4 : vector<8x1xf32> to vector<8x256xf32>
    %35 = arith.addf %33, %34 : vector<8x256xf32>
    %cst_20 = arith.constant 0.000000e+00 : f32
    %36 = vector.broadcast %cst_20 : f32 to vector<8x256xf32>
    %37 = arith.maximumf %35, %36 : vector<8x256xf32>
    %c0_21 = arith.constant 0 : index
    %c0_22 = arith.constant 0 : index
    %c0_23 = arith.constant 0 : index
    %38 = vector.load %arg8[%c0_21, %c0_22, %c0_23] : memref<1x8x256xf32, #tpu.memory_space<vmem>>, vector<1x8x256xf32>
    %39 = vector.shape_cast %38 : vector<1x8x256xf32> to vector<8x256xf32>
    %40 = vector.shape_cast %37 : vector<8x256xf32> to vector<1x8x256xf32>
    tpu.vector_store %arg8[%c0_21, %c0_22, %c0_23], %40 {strides = array<i32>} : memref<1x8x256xf32, #tpu.memory_space<vmem>>, vector<1x8x256xf32>,
    return
  }
  func.func @transform_0(%arg0: i32) -> (i32, i32, i32) {
    %c0_i32 = arith.constant 0 : i32
    %c0_i32_0 = arith.constant 0 : i32
    %c0_i32_1 = arith.constant 0 : i32
    return %arg0, %c0_i32, %c0_i32_0 : i32, i32, i32
  }
  func.func @transform_1(%arg0: i32) -> (i32, i32, i32) {
    %c0_i32 = arith.constant 0 : i32
    %c0_i32_0 = arith.constant 0 : i32
    %c0_i32_1 = arith.constant 0 : i32
    return %arg0, %c0_i32, %c0_i32_0 : i32, i32, i32
  }
  func.func @transform_2(%arg0: i32) -> (i32, i32, i32) {
    %c0_i32 = arith.constant 0 : i32
    %c0_i32_0 = arith.constant 0 : i32
    %c0_i32_1 = arith.constant 0 : i32
    return %arg0, %c0_i32, %c0_i32_0 : i32, i32, i32
  }
  func.func @transform_3(%arg0: i32) -> (i32, i32) {
    %c0_i32 = arith.constant 0 : i32
    %c0_i32_0 = arith.constant 0 : i32
    %c0_i32_1 = arith.constant 0 : i32
    return %c0_i32, %c0_i32_0 : i32, i32
  }
  func.func @transform_4(%arg0: i32) -> (i32, i32) {
    %c0_i32 = arith.constant 0 : i32
    %c0_i32_0 = arith.constant 0 : i32
    %c0_i32_1 = arith.constant 0 : i32
    return %c0_i32, %c0_i32_0 : i32, i32
  }
  func.func @transform_5(%arg0: i32) -> (i32, i32) {
    %c0_i32 = arith.constant 0 : i32
    %c0_i32_0 = arith.constant 0 : i32
    %c0_i32_1 = arith.constant 0 : i32
    return %c0_i32, %c0_i32_0 : i32, i32
  }
  func.func @transform_6(%arg0: i32) -> (i32, i32) {
    %c0_i32 = arith.constant 0 : i32
    %c0_i32_0 = arith.constant 0 : i32
    %c0_i32_1 = arith.constant 0 : i32
    return %c0_i32, %c0_i32_0 : i32, i32
  }
  func.func @transform_7(%arg0: i32) -> (i32, i32, i32) {
    %c0_i32 = arith.constant 0 : i32
    %c0_i32_0 = arith.constant 0 : i32
    %c0_i32_1 = arith.constant 0 : i32
    return %arg0, %c0_i32, %c0_i32_0 : i32, i32, i32
  }
}

</mosaic_0001>

<bundles_post_ra>
// kernel: tpu_custom_call.1
= control target key start
LH: loop header
LB: loop body
LE: loop exit
PB: predicated region body
PF: predicated region fallthrough
CT: control target
= control target key end

     0   :  { %12 = vsyncpa [#allocation3], 0  ;;  %s1188_s0 = inlined_call_operand.vmem [shape: f32[2,4,64], index: 0, kind: input, shape index: {}]   ;;  %s1189_s1 = inlined_call_operand.vmem [shape: f32[2,3,256], index: 1, kind: input, shape index: {}]   ;;  %s1190_s2 = inlined_call_operand.vmem [shape: f32[2,3,256], index: 2, kind: input, shape index: {}]   ;;  %s1191_s3 = inlined_call_operand.vmem [shape: f32[2,256], index: 3, kind: input, shape index: {}]   ;;  %s1192_s4 = inlined_call_operand.hbm [shape: f32[64,256], index: 4, kind: input, shape index: {}]   ;;  %s1193_s5 = inlined_call_operand.vmem [shape: f32[24,30], index: 5, kind: input, shape index: {}]   ;;  %s1194_s6 = inlined_call_operand.vmem [shape: f32[8,1], index: 6, kind: input, shape index: {}]   ;;  %s1195_s7 = inlined_call_operand.hbm [shape: f32[2,8,256], index: 7, kind: output, shape index: {}]  }
   0x1   :  { %13 = vsyncpa [#allocation4], 0 }
   0x2   :  { %15 = vsyncpa [#allocation4 + $0x1], 0  ;;  %s1013_s24 = smov 0   ;;  %s1015_s25 = smov 0  }
   0x3   :  { %s1017_s26 = smov 0   ;;  %s1019_s27 = smov 0  }
   0x4 LB: > { %s1034_s28 = sadd.s32 4294967295, %s961_s27   ;;  %s783_s29 = sadd.s32 4294967294, %s961_s27   ;;  %s961_s27 = sphi %s1019_s27, %s1203_s27   ;;  %s957_s26 = sphi %s1017_s26, %s1202_s26   ;;  %s953_s25 = sphi %s1015_s25, %s1201_s25   ;;  %s949_s24 = sphi %s1013_s24, %s1200_s24  }
   0x5   : > { %s1038_s30 = sadd.s32 1, %s961_s27   ;;  %s190_s8 = sadd.s32 1, %s957_s26 }
   0x6   : > { %s187_s9 = ssub.s32 %s961_s27, %s1038_s30  ;;  %p200_p0 = scmp.ne.s32.totalorder %s957_s26, %s953_s25 }
   0x7   : > { %p188_p1 = scmp.eq.s32.totalorder %s187_s9, 0  ;;  %p201_p2 = scmp.eq.s32.totalorder %s1034_s28, 1 }
   0x8   : > { %p206_p3 = scmp.ne.s32.totalorder %s953_s25, %s949_s24  ;;  %p207_p4 = scmp.eq.s32.totalorder %s783_s29, 1 }
   0x9   : > { %s1049_s10 = scalar_select %p188_p1, %s957_s26, %s190_s8  }
   0xa   : > { %p1051_p5 = por %p201_p2, %p200_p0  ;;  %p1055_p6 = por %p207_p4, %p206_p3 }
   0xb   : > { %p784_p7 = scmp.ge.s32.totalorder %s961_s27, 1  ;;  %p214_p8 = scmp.lt.s32.totalorder %s961_s27, 3 }
   0xc   : > { %s1197_s12 = scalar_select %p1055_p6, 1, 0 }
   0xd   : > { %p824_p9 = scmp.eq.s32.totalorder %s1034_s28, 0  ;;  %p1062_p10 = pnand %p784_p7, %p214_p8 }
   0xe   : > { %s963_s14 = smov [#allocation2]  }
   0xf   : > { %s229_s15 = sshll.u32 %s963_s14, 4  ;;  %p816_p11 = pneg %p1062_p10  ;;  %s230_s15 = int_to_ptr.vmem [resolvable:$true] %s229_s15 }
  0x10   : > { %s882_s16 = scalar_lea.vmem %s230_s15, 2048  ;;  %p890_p3 = scmp.lt.s32.totalorder %s230_s15, %s230_s15 }
  0x11   : > { %p817_p12 = pnand %p824_p9, %p816_p11  ;;  %p883_p0 = scmp.ne.s32.totalorder %s230_s15, %s882_s16 }
  0x12   : > { %p891_p4 = scmp.lt.s32.totalorder %s882_s16, %s882_s16 }
  0x13   : > { %p873_p13 = pneg %p817_p12 }
  0x14   : > { %p892_p6 = por %p891_p4, %p890_p3 }
  0x15   : > { %p885_p1 = pnand %p883_p0, %p873_p13 }
  0x17   : > { %p886_p2 = pneg %p885_p1 }
  0x19   : > { %p893_p7 = pnand %p892_p6, %p886_p2 }
  0x1b   : > { %896 = shalt.err (!%p893_p7)
}
  0x1c   : > { %s964_s17 = smov 256   ;;  %s965_s18 = smov 16  }
  0x1d   : > { %819 = dma.hbm_to_vmem [thread:$0]  (!%p817_p12), %s1192_s4, 2048, %s230_s15, [#allocation3], %s964_s17, %s964_s17, %s965_s18  }
  0x1e   : > { %274 = sbr.rel (%p1062_p10) target bundleno = 724 (0x2d4), region = 48 }
  0x23   : > { %940 = dma.done.wait (%p824_p9), [#allocation3], 2048  }
  0x24   : > { %942 = vsyncadd (%p824_p9), [#allocation3], 4294965248  ;;  %v966_v0 = vmov 0.0   ;;  %v347_v1 = vld [vmem:[#allocation2 + $0x78] sm:$0xff]  ;;  %v346_v2 = vld [vmem:[#allocation2 + $0x70] sm:$0xff]  ;;  %p315_p6 = scmp.lt.s32.totalorder %s1034_s28, 1  ;;  %v465_v30 = vlaneseq }
  0x25   : > { %421 = vmatprep.mubr.f32.mxu0 %v966_v0  ;;  %617 = vmatprep.mubr.f32.mxu1 %v966_v0  ;;  %v345_v3 = vld [vmem:[#allocation2 + $0x68] sm:$0xff]  ;;  %v344_v4 = vld [vmem:[#allocation2 + $0x60] sm:$0xff]  ;;  %v343_v5 = vld [vmem:[#allocation2 + $0x58] sm:$0xff]  ;;  %vm353_vm0 = vcmask 523264   ;;  %vm439_vm1 = vcmask 1043456   ;;  %vm442_vm2 = vcmask 1046528  }
  0x26   : > { %373 = vmatprep.subr.mxu0 %v347_v1  ;;  %v342_v6 = vld [vmem:[#allocation2 + $0x50] sm:$0xff]  ;;  %v341_v7 = vld [vmem:[#allocation2 + $0x48] sm:$0xff]  ;;  %s1083_s21 = scalar_select %p315_p6, %s1034_s28, 1  ;;  %v340_v8 = vld [vmem:[#allocation2 + $0x40] sm:$0xff]  ;;  %v466_v31 = vshrl.u32 %v465_v30, 7  ;;  %vm487_vm3 = vcmask 1039360  }
  0x27   : > { %374 = vmatpush1.msra.mxu0 %v346_v2  ;;  %v339_v9 = vld [vmem:[#allocation2 + $0x38] sm:$0xff]  ;;  %v338_v10 = vld [vmem:[#allocation2 + $0x30] sm:$0xff]  ;;  %v337_v11 = vld [vmem:[#allocation2 + $0x28] sm:$0xff]  ;;  %s967_s19 = smov 127   ;;  %s968_s20 = smov 1   ;;  %vm455_vm4 = vcmask 7168  }
  0x28   : > { %375 = vmatprep.subr.mxu0 %v345_v3  ;;  %s790_s22 = sshll.u32 %s1083_s21, 2  ;;  %v336_v12 = vld [vmem:[#allocation2 + $0x20] sm:$0xff]  ;;  %v335_v13 = vld [vmem:[#allocation2 + $0x18] sm:$0xff]  ;;  %v334_v14 = vld [vmem:[#allocation2 + $0x10] sm:$0xff]  ;;  %s807_s9 = sshll.u32 %s1083_s21, 3  ;;  %v467_v32 = vsub.s32 0, %v466_v31 }
  0x29   : > { %376 = vmatpush1.msra.mxu0 %v344_v4  ;;  %s318_s8 = scalar_lea.vmem %s1188_s0, %s790_s22  ;;  %v333_v15 = vld [vmem:[#allocation2 + $0x8] sm:$0xff]  ;;  %v332_v16 = vld [vmem:[#allocation2] sm:$0xff]  ;;  %s328_s15 = scalar_lea.vmem %s1190_s2, %s807_s9  ;;  %v471_v33 = vsub.s32 1, %v466_v31  ;;  %vm548_vm5 = vcmask 1045504   ;;  %vm511_vm6 = vcmask 1041408   ;;  %vm538_vm7 = vcmask 244736  }
  0x2a   : > { %377 = vmatprep.subr.mxu0 %v343_v5  ;;  %v352_v17 = vld [vmem:[%s318_s8] sm:$0xf]  ;;  %s323_s18 = scalar_lea.vmem %s1189_s1, %s807_s9  ;;  %s970_s17 = smov 16   ;;  %vm642_vm8 = vcmask 130048   ;;  %vm655_vm9 = vcmask 916480  }
  0x2b   : > { %378 = vmatpush1.msra.mxu0 %v342_v6  ;;  %v429_v18 = vld [vmem:[%s328_s15] sm:$0x77]  ;;  %s312_s21 = sand.u32 1, %s953_s25   ;;  %s809_s23 = sshll.u32 %s1034_s28, 8 }
  0x2c   : > { %379 = vmatprep.subr.mxu0 %v341_v7  ;;  %v428_v19 = vld [vmem:[%s323_s18] sm:$0x77]  ;;  %v434_v20 = vcombine.high %v429_v18, %v429_v18  ;;  %v1096_v22 = vrot.slane %v429_v18, 1  ;;  %v349_v18 = vld [vmem:[%s1193_s5 + $0x8] sm:$0xff]  ;;  %s789_s22 = sshll.u32 %s312_s21, 4  ;;  %s1153_s14 = scalar_lea.hbm %s1195_s7, %s809_s23 }
  0x2d   : > { %380 = vmatpush1.msra.mxu0 %v340_v8  ;;  %v431_v21 = vcombine.low %v428_v19, %v428_v19  ;;  %v795_v34 = vld [vmem:[%s1191_s3 + $0x1] ss:$2 sm:$0x3]  ;;  %v329_v42 = vld [vmem:[%s1191_s3] ss:$2 sm:$0x3] }
  0x2e   : > { %381 = vmatprep.subr.mxu0 %v339_v9  ;;  %v436_v24 = vrot.slane %v434_v20, 1  ;;  %v500_v37 = vrot.slane %v795_v34, %v467_v32  ;;  %v504_v38 = vrot.slane %v795_v34, %v471_v33  ;;  %v514_v49 = vrot.slane %v1096_v22, 6  ;;  %s314_s29 = scalar_lea.vmem [#allocation5], %s789_s22  ;;  %s674_s15 = scalar_lea.sflag [#allocation4], %s312_s21 }
  0x2f   : > { %382 = vmatpush1.msra.mxu0 %v338_v10  ;;  %v472_v53 = vrot.slane %v329_v42, %v471_v33  ;;  %v468_v56 = vrot.slane %v329_v42, %v467_v32  ;;  %v969_v20 = vmov 0   ;;  %s688_s8 = sshll.u32 %s314_s29, 4  ;;  %s972_s28 = smov [#allocation5]   ;;  %s689_s8 = int_to_ptr.vmem [resolvable:$true] %s688_s8 }
  0x30   : > { %383 = vmatprep.subr.mxu0 %v337_v11  ;;  %v516_v48 = vrot.slane %v436_v24, 6  ;;  %868 = vset.pattern.permute.xlu0 %v969_v20  ;;  %s897_s16 = scalar_lea.vmem %s689_s8, 256 }
  0x31   : > { %384 = vmatpush1.msra.mxu0 %v336_v12  ;;  %p898_p8 = scmp.ne.s32.totalorder %s689_s8, %s897_s16 }
  0x32   : > { %385 = vmatprep.subr.mxu0 %v335_v13 }
  0x33   : > { %386 = vmatpush1.msra.mxu0 %v334_v14  ;;  %p899_p9 = pnand %p898_p8, %p1051_p5 }
  0x34   : > { %387 = vmatprep.subr.mxu0 %v333_v15 }
  0x35   : > { %388 = vmatpush1.msra.mxu0 %v332_v16  ;;  %p900_p10 = pneg %p899_p9 }
  0x36   : > { %796 = vmatmul.mubr.msk.f32.vlgmr.msra.gmra.mxu0 %vm353_vm0, %v352_v17  ;;  %v348_v17 = vld [vmem:[%s1193_s5] sm:$0xff] }
  0xf6   : > { %v423_v23 = vpop.f32.mrf.mxu0 }
  0xf7   : > { %v440_v25 = vsel %vm439_vm1, %v423_v23, %v431_v21  ;;  %v351_v23 = vld [vmem:[%s1194_s6] sm:$0xff] }
  0xf8   : > { %v425_v26 = vpop.f32.mrf.mxu0  ;;  %v1100_v27 = vsel %vm442_vm2, %v440_v25, %v1096_v22 }
  0xf9   : > { %v441_v28 = vsel %vm439_vm1, %v425_v26, %v428_v19  ;;  %479 = vrot.lane.b32.xlu1 %v1100_v27, %s967_s19  ;;  %v512_v54 = vrot.slane %v1100_v27, 6  ;;  %v350_v19 = vld [vmem:[%s1193_s5 + $0x10] sm:$0xff] }
  0xfa   : > { %v1104_v29 = vsel %vm442_vm2, %v441_v28, %v436_v24 }
  0xfb   : > { %481 = vrot.lane.b32.xlu0 %v1104_v29, %s967_s19  ;;  %v513_v55 = vrot.slane %v1104_v29, 6  ;;  %v515_v9 = vsel %vm511_vm6, %v512_v54, %v514_v49 }
  0xfd   : > { %483 = vrot.lane.b32.xlu1 %v1096_v22, %s967_s19  ;;  %v517_v5 = vsel %vm511_vm6, %v513_v55, %v516_v48 }
  0xff   : > { %485 = vrot.lane.b32.xlu0 %v436_v24, %s967_s19 }
 0x101   : > { %453 = vrot.lane.b32.xlu1 %v436_v24, %s968_s20 }
 0x103   : > { %451 = vrot.lane.b32.xlu0 %v1096_v22, %s968_s20 }
 0x105   : > { %449 = vrot.lane.b32.xlu1 %v1104_v29, %s968_s20 }
 0x107   : > { %447 = vrot.lane.b32.xlu0 %v1100_v27, %s968_s20  ;;  %s971_s20 = smov 112  }
 0x16b   : > { %v480_v35 = vpop.permute.xlu1 %479 }
 0x16d   : > { %v482_v36 = vpop.permute.xlu0 %481 }
 0x16e   : > { %v488_v39 = vsel %vm487_vm3, %v480_v35, %v482_v36  ;;  %v494_v40 = vsel %vm487_vm3, %v482_v36, 0.0 }
 0x16f   : > { %v484_v41 = vpop.permute.xlu1 %483  ;;  %v507_v43 = vmul.f32 %v500_v37, %v488_v39  ;;  %v508_v44 = vmul.f32 %v504_v38, %v494_v40 }
 0x171   : > { %v486_v45 = vpop.permute.xlu0 %485  ;;  %v526_v57 = vrot.slane %v507_v43, 4  ;;  %v527_v58 = vrot.slane %v508_v44, 4 }
 0x172   : > { %v489_v46 = vsel %vm487_vm3, %v484_v41, %v486_v45  ;;  %v495_v47 = vsel %vm487_vm3, %v486_v45, 0.0 }
 0x173   : > { %v509_v50 = vmul.f32 %v500_v37, %v489_v46  ;;  %v510_v51 = vmul.f32 %v504_v38, %v495_v47  ;;  %v454_v52 = vpop.permute.xlu1 %453  ;;  %v537_v8 = vsel %vm439_vm1, %v517_v5, %v527_v58  ;;  %v536_v12 = vsel %vm439_vm1, %v515_v9, %v526_v57 }
 0x175   : > { %v528_v59 = vrot.slane %v509_v50, 4  ;;  %v530_v60 = vrot.slane %v510_v51, 4  ;;  %v452_v61 = vpop.permute.xlu0 %451 }
 0x176   : > { %v457_v62 = vsel %vm455_vm4, %v452_v61, %v454_v52  ;;  %v463_v63 = vsel %vm455_vm4, 0.0, %v452_v61 }
 0x177   : > { %v478_v1 = vmul.f32 %v472_v53, %v457_v62  ;;  %v531_v2 = vsel %vm439_vm1, %v527_v58, %v530_v60  ;;  %v529_v3 = vsel %vm439_vm1, %v526_v57, %v528_v59  ;;  %v477_v4 = vmul.f32 %v468_v56, %v463_v63  ;;  %v450_v6 = vpop.permute.xlu1 %449 }
 0x178   : > { %797 = vmatprep.subr.msk.mxu1 %vm548_vm5, %v531_v2 }
 0x179   : > { %v448_v7 = vpop.permute.xlu0 %447  ;;  %798 = vmatpush1.msk.msra.mxu1 %vm548_vm5, %v529_v3  ;;  %v535_v14 = vsel %vm511_vm6, %v478_v1, %v513_v55  ;;  %v534_v15 = vsel %vm511_vm6, %v477_v4, %v512_v54 }
 0x17a   : > { %v456_v10 = vsel %vm455_vm4, %v448_v7, %v450_v6  ;;  %v462_v11 = vsel %vm455_vm4, 0.0, %v448_v7  ;;  %579 = vmatprep.subr.mxu1 %v537_v8 }
 0x17b   : > { %v476_v13 = vmul.f32 %v472_v53, %v456_v10  ;;  %580 = vmatpush1.msra.mxu1 %v536_v12  ;;  %v475_v16 = vmul.f32 %v468_v56, %v462_v11 }
 0x17c   : > { %581 = vmatprep.subr.mxu1 %v535_v14 }
 0x17d   : > { %582 = vmatpush1.msra.mxu1 %v534_v15 }
 0x17e   : > { %583 = vmatprep.subr.mxu1 %v476_v13 }
 0x17f   : > { %584 = vmatpush1.msra.mxu1 %v475_v16 }
 0x180   : > { %799 = vmatmul.mubr.msk.f32.vlgmr.msra.gmra.mxu1 %vm538_vm7, %v348_v17 }
 0x181   : > { %623 = vmatprep.mubr.f32.mxu1 %v966_v0 }
 0x184   : > { %800 = vmatmul.mubr.msk.f32.gmra.mxu1 %vm538_vm7, %v349_v18 }
 0x185   : > { %629 = vmatprep.mubr.f32.mxu1 %v966_v0 }
 0x188   : > { %801 = vmatmul.mubr.msk.f32.gmra.mxu1 %vm538_vm7, %v350_v19 }
 0x240   : > { %v619_v21 = vpop.f32.mrf.mxu1 }
 0x241   : > { %638 = vrot.lane.b32.xlu0 %v619_v21, %s970_s17 }
 0x242   : > { %v621_v22 = vpop.f32.mrf.mxu1 }
 0x243   : > { %640 = vrot.lane.b32.xlu1 %v621_v22, %s970_s17  ;;  %s901_s17 = sshll.u32 %s972_s28, 4  ;;  %s902_s17 = int_to_ptr.vmem [resolvable:$false] %s901_s17 }
 0x244   : > { %v625_v24 = vpop.f32.mrf.mxu1  ;;  %s903_s18 = scalar_lea.vmem %s902_s17, 512  ;;  %p904_p11 = scmp.lt.s32.totalorder %s689_s8, %s902_s17 }
 0x245   : > { %664 = vperm.xlu0 %868, %v351_v23   ;;  %p905_p12 = scmp.lt.s32.totalorder %s903_s18, %s897_s16 }
 0x246   : > { %v627_v0 = vpop.f32.mrf.mxu1 }
 0x247   : > { %p906_p13 = por %p905_p12, %p904_p11 }
 0x248   : > { %v631_v25 = vpop.f32.mrf.mxu1 }
 0x249   : > { %651 = vrot.lane.b32.xlu1 %v631_v25, %s971_s20  ;;  %p907_p0 = pnand %p906_p13, %p900_p10 }
 0x24a   : > { %v633_v26 = vpop.f32.mrf.mxu1 }
 0x24d   : > { %653 = vrot.lane.b32.xlu1 %v633_v26, %s971_s20 }
 0x2b3   : > { %v639_v28 = vpop.permute.xlu0 %638 }
 0x2b4   : > { %v646_v30 = vsel %vm642_vm8, 0.0, %v639_v28 }
 0x2b5   : > { %v641_v27 = vpop.permute.xlu1 %640  ;;  %v647_v32 = vadd.f32 %v646_v30, %v625_v24 }
 0x2b6   : > { %v643_v31 = vsel %vm642_vm8, %v639_v28, %v641_v27 }
 0x2b7   : > { %v648_v33 = vadd.f32 %v643_v31, %v627_v0 }
 0x2bb   : > { %v652_v29 = vpop.permute.xlu1 %651 }
 0x2bf   : > { %v654_v34 = vpop.permute.xlu1 %653 }
 0x2c0   : > { %v656_v35 = vsel %vm655_vm9, %v652_v29, %v654_v34  ;;  %v659_v36 = vsel %vm655_vm9, %v654_v34, 0.0  ;;  %v665_v37 = vpop.permute.xlu0 %664 }
 0x2c1   : > { %v661_v38 = vadd.f32 %v659_v36, %v648_v33  ;;  %v660_v39 = vadd.f32 %v656_v35, %v647_v32 }
 0x2c3   : > { %v667_v40 = vadd.f32 %v665_v37, %v660_v39  ;;  %v668_v41 = vadd.f32 %v665_v37, %v661_v38 }
 0x2c5   : > { %v669_v42 = vmax.f32 %v667_v40, 0.0  ;;  %v670_v43 = vmax.f32 %v668_v41, 0.0 }
 0x2c7   : > { %671 = vst [vmem:[%s314_s29] sm:$0xff] %v669_v42  ;;  %672 = vst [vmem:[%s314_s29 + $0x8] sm:$0xff] %v670_v43 }
 0x2c8   : > { %910 = shalt.err (!%p907_p0)
}
 0x2c9   : > { %s911_s19 = scalar_lea.hbm %s1153_s14, 256  ;;  %s915_s22 = scalar_lea.hbm %s1195_s7, 512 }
 0x2ca   : > { %p912_p1 = scmp.ne.s32.totalorder %s1153_s14, %s911_s19  ;;  %p916_p4 = scmp.lt.s32.totalorder %s1153_s14, %s1195_s7 }
 0x2cb   : > { %p917_p7 = scmp.lt.s32.totalorder %s915_s22, %s911_s19 }
 0x2cc   : > { %p913_p2 = pnand %p912_p1, %p1051_p5 }
 0x2cd   : > { %p918_p6 = por %p917_p7, %p916_p4 }
 0x2ce   : > { %p914_p3 = pneg %p913_p2 }
 0x2d0   : > { %p919_p8 = pnand %p918_p6, %p914_p3 }
 0x2d2   : > { %922 = shalt.err (!%p919_p8)
}
 0x2d3   : > { %814 = dma.vmem_to_hbm [thread:$0]  (%p1051_p5), %s689_s8, 256, %s1153_s14, %s674_s15  }
 0x2d4 PF: > { %p826_p9 = scmp.ge.s32.totalorder %s961_s27, 2  ;;  %s700_s9 = sand.u32 1, %s949_s24  }
 0x2d5   : > { %p1199_p10 = scmp.ne.s32.totalorder %s1197_s12, 0  ;;  %s701_s13 = scalar_lea.sflag [#allocation4], %s700_s9 }
 0x2d7   : > { %p821_p11 = pnand %p826_p9, %p1199_p10 }
 0x2d9   : > { %p822_p12 = pneg %p821_p11 }
 0x2db   : > { %944 = dma.done.wait (%p822_p12), %s701_s13, 256  }
 0x2dc   : > { %946 = vsyncadd (%p822_p12), %s701_s13, 4294967040  ;;  %p18_p13 = scmp.ge.s32.totalorder %s1038_s30, 4   ;;  %s1200_s24 = smov %s953_s25 }
 0x2dd   : > { %s1201_s25 = smov %s957_s26  ;;  %s1202_s26 = smov %s1049_s10 }
 0x2de   : > { %s1203_s27 = smov %s1038_s30  ;;  %20 = sbr.rel (!%p18_p13) target bundleno = 4 (0x4), region = 95 }
 0x2e3   :  { %706 = vsyncpa [#allocation3], 1 }
 0x2e4   :  { %708 = vsyncpa [#allocation3 + $0x1], 1 }
 0x2e5   :  { %709 = vsyncpa [#allocation4], 1 }
 0x2e6   :  { %711 = vsyncpa [#allocation4 + $0x1], 1 }

</bundles_post_ra>
